<compile_context>
chip_gen: v7x
topology: tpu7x:2x2x1
jax: 0.10.0
libtpu: 0.0.40
codegen_flags: <defaults>
</compile_context>

<pallas_src>
import jax
import jax.numpy as jnp
from jax.experimental import pallas as pl
from jax.experimental.pallas import tpu as pltpu

IN_CHANNELS = 3
NUM_ACTIONS = 5
KH = KW = 3
H = W = 3                         # forced by fc1 in_features == 32
CONV_OUT = 32
FC1_OUT = 16
FLAT_IN = IN_CHANNELS * KH * KW   # 27

K_PAD = 32                        # 27 -> 32 (layer-1 contraction dim)
OUT_PAD = 8                       # 5  -> 8  (output lanes)
MAX_TB = 512                      # batch tile (rows per grid step)


def _round_up(n, m):
    return ((n + m - 1) // m) * m


def dqn_kernel(x_ref, w1_ref, b1_ref, w2_ref, b2_ref, w3_ref, b3_ref, o_ref):
    # conv1 (as matmul) + ReLU      (TB, 32) @ (32, 32) -> f32 acc
    h = jnp.dot(x_ref[...], w1_ref[...], preferred_element_type=jnp.float32)
    h = jnp.maximum(h + b1_ref[...], 0.0).astype(jnp.bfloat16)
    # fc1 + ReLU                    (TB, 32) @ (32, 16) -> f32 acc
    h = jnp.dot(h, w2_ref[...], preferred_element_type=jnp.float32)
    h = jnp.maximum(h + b2_ref[...], 0.0).astype(jnp.bfloat16)
    # fc2 (no activation)           (TB, 16) @ (16, 8)  -> f32
    o_ref[...] = (
        jnp.dot(h, w3_ref[...], preferred_element_type=jnp.float32) + b3_ref[...]
    )


def init_params(key):
    k1, k2, k3, k4, k5, k6 = jax.random.split(key, 6)
    conv_w = jax.random.normal(k1, (CONV_OUT, IN_CHANNELS, KH, KW), jnp.float32) * 0.1
    conv_b = jax.random.normal(k2, (CONV_OUT,), jnp.float32) * 0.1
    fc1_w = jax.random.normal(k3, (FC1_OUT, CONV_OUT), jnp.float32) * 0.1
    fc1_b = jax.random.normal(k4, (FC1_OUT,), jnp.float32) * 0.1
    fc2_w = jax.random.normal(k5, (NUM_ACTIONS, FC1_OUT), jnp.float32) * 0.1
    fc2_b = jax.random.normal(k6, (NUM_ACTIONS,), jnp.float32) * 0.1
    return dict(conv_w=conv_w, conv_b=conv_b,
                fc1_w=fc1_w, fc1_b=fc1_b,
                fc2_w=fc2_w, fc2_b=fc2_b)


def dqn_forward(x, params, block_b=None):
    """x: (B, C, 3, 3) float32 NCHW.  Returns (B, NUM_ACTIONS) float32."""
    B = x.shape[0]
    if block_b is None:
        block_b = min(MAX_TB, _round_up(B, 16))
    tb = _round_up(block_b, 16)           # bf16 sublane packing -> multiple of 16
    bp = _round_up(B, tb)
    grid = (bp // tb,)

    # Input: flatten (conv with 1x1 output == matmul over C*KH*KW), bf16 cast,
    # pad batch -> bp and K 27 -> 32 in a single pad op.
    x_flat = x.reshape(B, FLAT_IN).astype(jnp.bfloat16)
    x_p = jnp.pad(x_flat, ((0, bp - B), (0, K_PAD - FLAT_IN)))

    # conv weight (O, C, KH, KW) -> (C*KH*KW, O) = (27, 32), pad K -> (32, 32).
    w1 = params["conv_w"].reshape(CONV_OUT, FLAT_IN).T.astype(jnp.bfloat16)
    w1_p = jnp.pad(w1, ((0, K_PAD - FLAT_IN), (0, 0)))
    b1 = params["conv_b"].reshape(1, CONV_OUT)                       # (1, 32) f32

    w2 = params["fc1_w"].T.astype(jnp.bfloat16)                      # (32, 16)
    b2 = params["fc1_b"].reshape(1, FC1_OUT)                         # (1, 16) f32

    w3 = params["fc2_w"].T.astype(jnp.bfloat16)                      # (16, 5)
    w3_p = jnp.pad(w3, ((0, 0), (0, OUT_PAD - NUM_ACTIONS)))         # (16, 8)
    b3 = jnp.pad(params["fc2_b"].reshape(1, NUM_ACTIONS),
                 ((0, 0), (0, OUT_PAD - NUM_ACTIONS)))               # (1, 8) f32

    fixed = lambda shape: pl.BlockSpec(shape, lambda i: tuple(0 for _ in shape))

    out_p = pl.pallas_call(
        dqn_kernel,
        out_shape=jax.ShapeDtypeStruct((bp, OUT_PAD), jnp.float32),
        grid_spec=pltpu.PrefetchScalarGridSpec(
            num_scalar_prefetch=0,
            grid=grid,
            in_specs=[
                pl.BlockSpec((tb, K_PAD), lambda i: (i, 0)),   # x tile (batch-indexed)
                fixed((K_PAD, CONV_OUT)),                      # w1 (VMEM-resident)
                fixed((1, CONV_OUT)),                          # b1
                fixed((CONV_OUT, FC1_OUT)),                    # w2
                fixed((1, FC1_OUT)),                           # b2
                fixed((FC1_OUT, OUT_PAD)),                     # w3
                fixed((1, OUT_PAD)),                           # b3
            ],
            out_specs=pl.BlockSpec((tb, OUT_PAD), lambda i: (i, 0)),
        ),
        compiler_params=pltpu.CompilerParams(
            dimension_semantics=("parallel",)),   # 2-TC sharding on v7x; no-op on v5e/v6e
    )(x_p, w1_p, b1, w2, b2, w3_p, b3)

    return out_p[:B, :NUM_ACTIONS]


def dqn_reference(x, params):
    """Pure-JAX f32 reference of the PyTorch forward (correctness check)."""
    B = x.shape[0]
    x_flat = x.reshape(B, FLAT_IN)
    h = jnp.maximum(
        x_flat @ params["conv_w"].reshape(CONV_OUT, FLAT_IN).T + params["conv_b"], 0.0)
    h = jnp.maximum(h @ params["fc1_w"].T + params["fc1_b"], 0.0)
    return h @ params["fc2_w"].T + params["fc2_b"]


if __name__ == "__main__":
    key = jax.random.PRNGKey(0)
    pkey, xkey, xkey2 = jax.random.split(key, 3)
    params = init_params(pkey)

    # Small deterministic input: batch=2, channels=3, spatial 3x3 (NCHW).
    x = jax.random.normal(xkey, (2, IN_CHANNELS, H, W), jnp.float32)
    out = jax.block_until_ready(dqn_forward(x, params))
    ref = dqn_reference(x, params)
    assert out.shape == (2, NUM_ACTIONS)
    assert jnp.allclose(out, ref, atol=5e-2, rtol=5e-2)   # bf16 MXU tolerance

    # Exercise the multi-tile batch grid (grid > 1, padded tail rows).
    x2 = jax.random.normal(xkey2, (40, IN_CHANNELS, H, W), jnp.float32)
    out2 = jax.block_until_ready(dqn_forward(x2, params, block_b=16))
    ref2 = dqn_reference(x2, params)
    assert out2.shape == (40, NUM_ACTIONS)
    assert jnp.allclose(out2, ref2, atol=5e-2, rtol=5e-2)

    print("KERNEL_OK")
</pallas_src>

<mosaic_0001>
module attributes {stable_mosaic.version = 11 : i64} {
  func.func @dqn_kernel(%arg0: i32, %arg1: memref<16x32xbf16, #tpu.memory_space<vmem>>, %arg2: memref<32x32xbf16, #tpu.memory_space<vmem>>, %arg3: memref<1x32xf32, #tpu.memory_space<vmem>>, %arg4: memref<32x16xbf16, #tpu.memory_space<vmem>>, %arg5: memref<1x16xf32, #tpu.memory_space<vmem>>, %arg6: memref<16x8xbf16, #tpu.memory_space<vmem>>, %arg7: memref<1x8xf32, #tpu.memory_space<vmem>>, %arg8: memref<16x8xf32, #tpu.memory_space<vmem>>) attributes {dimension_semantics = [#tpu.dimension_semantics<parallel>], iteration_bounds = array<i64: 1>, scalar_prefetch = 0 : i64, scratch_operands = 0 : i64, tpu.core_type = #tpu.core_type<tc>, window_params = [{transform_indices = @transform_0, window_bounds = array<i64: 16, 32>}, {pipeline_mode = #tpu.pipeline_mode<synchronous>, transform_indices = @transform_1, window_bounds = array<i64: 32, 32>}, {pipeline_mode = #tpu.pipeline_mode<synchronous>, transform_indices = @transform_2, window_bounds = array<i64: 1, 32>}, {pipeline_mode = #tpu.pipeline_mode<synchronous>, transform_indices = @transform_3, window_bounds = array<i64: 32, 16>}, {pipeline_mode = #tpu.pipeline_mode<synchronous>, transform_indices = @transform_4, window_bounds = array<i64: 1, 16>}, {pipeline_mode = #tpu.pipeline_mode<synchronous>, transform_indices = @transform_5, window_bounds = array<i64: 16, 8>}, {pipeline_mode = #tpu.pipeline_mode<synchronous>, transform_indices = @transform_6, window_bounds = array<i64: 1, 8>}, {transform_indices = @transform_7, window_bounds = array<i64: 16, 8>}]} {
    %c0 = arith.constant 0 : index
    %c0_0 = arith.constant 0 : index
    %0 = vector.load %arg1[%c0, %c0_0] : memref<16x32xbf16, #tpu.memory_space<vmem>>, vector<16x32xbf16>
    %c0_1 = arith.constant 0 : index
    %c0_2 = arith.constant 0 : index
    %1 = vector.load %arg2[%c0_1, %c0_2] : memref<32x32xbf16, #tpu.memory_space<vmem>>, vector<32x32xbf16>
    %cst = arith.constant dense<0.000000e+00> : vector<16x32xf32>
    %2 = tpu.matmul %0, %1, %cst {dimension_numbers = #tpu.dot_dimension_numbers<[1], [0], [0], [1], [0, 0, 1, 1], [], []>} : vector<16x32xbf16>, vector<32x32xbf16>, vector<16x32xf32> -> vector<16x32xf32>
    %c0_3 = arith.constant 0 : index
    %c0_4 = arith.constant 0 : index
    %3 = vector.load %arg3[%c0_3, %c0_4] : memref<1x32xf32, #tpu.memory_space<vmem>>, vector<1x32xf32>
    %4 = vector.broadcast %3 : vector<1x32xf32> to vector<16x32xf32>
    %5 = arith.addf %2, %4 : vector<16x32xf32>
    %cst_5 = arith.constant 0.000000e+00 : f32
    %6 = vector.broadcast %cst_5 : f32 to vector<16x32xf32>
    %7 = arith.maximumf %5, %6 : vector<16x32xf32>
    %8 = arith.truncf %7 : vector<16x32xf32> to vector<16x32xbf16>
    %c0_6 = arith.constant 0 : index
    %c0_7 = arith.constant 0 : index
    %9 = vector.load %arg4[%c0_6, %c0_7] : memref<32x16xbf16, #tpu.memory_space<vmem>>, vector<32x16xbf16>
    %cst_8 = arith.constant dense<0.000000e+00> : vector<16x16xf32>
    %10 = tpu.matmul %8, %9, %cst_8 {dimension_numbers = #tpu.dot_dimension_numbers<[1], [0], [0], [1], [0, 0, 1, 1], [], []>} : vector<16x32xbf16>, vector<32x16xbf16>, vector<16x16xf32> -> vector<16x16xf32>
    %c0_9 = arith.constant 0 : index
    %c0_10 = arith.constant 0 : index
    %11 = vector.load %arg5[%c0_9, %c0_10] : memref<1x16xf32, #tpu.memory_space<vmem>>, vector<1x16xf32>
    %12 = vector.broadcast %11 : vector<1x16xf32> to vector<16x16xf32>
    %13 = arith.addf %10, %12 : vector<16x16xf32>
    %cst_11 = arith.constant 0.000000e+00 : f32
    %14 = vector.broadcast %cst_11 : f32 to vector<16x16xf32>
    %15 = arith.maximumf %13, %14 : vector<16x16xf32>
    %16 = arith.truncf %15 : vector<16x16xf32> to vector<16x16xbf16>
    %c0_12 = arith.constant 0 : index
    %c0_13 = arith.constant 0 : index
    %17 = vector.load %arg6[%c0_12, %c0_13] : memref<16x8xbf16, #tpu.memory_space<vmem>>, vector<16x8xbf16>
    %cst_14 = arith.constant dense<0.000000e+00> : vector<16x8xf32>
    %18 = tpu.matmul %16, %17, %cst_14 {dimension_numbers = #tpu.dot_dimension_numbers<[1], [0], [0], [1], [0, 0, 1, 1], [], []>} : vector<16x16xbf16>, vector<16x8xbf16>, vector<16x8xf32> -> vector<16x8xf32>
    %c0_15 = arith.constant 0 : index
    %c0_16 = arith.constant 0 : index
    %19 = vector.load %arg7[%c0_15, %c0_16] : memref<1x8xf32, #tpu.memory_space<vmem>>, vector<1x8xf32>
    %20 = vector.broadcast %19 : vector<1x8xf32> to vector<16x8xf32>
    %21 = arith.addf %18, %20 : vector<16x8xf32>
    %c0_17 = arith.constant 0 : index
    %c0_18 = arith.constant 0 : index
    %22 = vector.load %arg8[%c0_17, %c0_18] : memref<16x8xf32, #tpu.memory_space<vmem>>, vector<16x8xf32>
    tpu.vector_store %arg8[%c0_17, %c0_18], %21 {strides = array<i32>} : memref<16x8xf32, #tpu.memory_space<vmem>>, vector<16x8xf32>,
    return
  }
  func.func @transform_0(%arg0: i32) -> (i32, i32) {
    %c0_i32 = arith.constant 0 : i32
    %c0_i32_0 = arith.constant 0 : i32
    return %arg0, %c0_i32 : i32, i32
  }
  func.func @transform_1(%arg0: i32) -> (i32, i32) {
    %c0_i32 = arith.constant 0 : i32
    %c0_i32_0 = arith.constant 0 : i32
    %c0_i32_1 = arith.constant 0 : i32
    return %c0_i32, %c0_i32_0 : i32, i32
  }
  func.func @transform_2(%arg0: i32) -> (i32, i32) {
    %c0_i32 = arith.constant 0 : i32
    %c0_i32_0 = arith.constant 0 : i32
    %c0_i32_1 = arith.constant 0 : i32
    return %c0_i32, %c0_i32_0 : i32, i32
  }
  func.func @transform_3(%arg0: i32) -> (i32, i32) {
    %c0_i32 = arith.constant 0 : i32
    %c0_i32_0 = arith.constant 0 : i32
    %c0_i32_1 = arith.constant 0 : i32
    return %c0_i32, %c0_i32_0 : i32, i32
  }
  func.func @transform_4(%arg0: i32) -> (i32, i32) {
    %c0_i32 = arith.constant 0 : i32
    %c0_i32_0 = arith.constant 0 : i32
    %c0_i32_1 = arith.constant 0 : i32
    return %c0_i32, %c0_i32_0 : i32, i32
  }
  func.func @transform_5(%arg0: i32) -> (i32, i32) {
    %c0_i32 = arith.constant 0 : i32
    %c0_i32_0 = arith.constant 0 : i32
    %c0_i32_1 = arith.constant 0 : i32
    return %c0_i32, %c0_i32_0 : i32, i32
  }
  func.func @transform_6(%arg0: i32) -> (i32, i32) {
    %c0_i32 = arith.constant 0 : i32
    %c0_i32_0 = arith.constant 0 : i32
    %c0_i32_1 = arith.constant 0 : i32
    return %c0_i32, %c0_i32_0 : i32, i32
  }
  func.func @transform_7(%arg0: i32) -> (i32, i32) {
    %c0_i32 = arith.constant 0 : i32
    %c0_i32_0 = arith.constant 0 : i32
    return %arg0, %c0_i32 : i32, i32
  }
}

</mosaic_0001>

<bundles_post_ra>
// kernel: tpu_custom_call.1
= control target key start
LH: loop header
LB: loop body
LE: loop exit
PB: predicated region body
PF: predicated region fallthrough
CT: control target
= control target key end

     0   :  { %v292_v0 = vmov 0.0   ;;  %vm293_vm0 = vmmov 0   ;;  %vm57_vm1 = vcmask 261120   ;;  %vm190_vm2 = vcmask 130048   ;;  %s369_s1 = inlined_call_operand.vmem [shape: bf16[32,32], index: 1, kind: input, shape index: {}]   ;;  %s370_s0 = inlined_call_operand.vmem [shape: bf16[16,32], index: 0, kind: input, shape index: {}]   ;;  %s371_s3 = inlined_call_operand.vmem [shape: bf16[32,16], index: 3, kind: input, shape index: {}]   ;;  %s372_s2 = inlined_call_operand.vmem [shape: f32[1,32], index: 2, kind: input, shape index: {}]   ;;  %s373_s5 = inlined_call_operand.vmem [shape: bf16[16,8], index: 5, kind: input, shape index: {}]   ;;  %s374_s4 = inlined_call_operand.vmem [shape: f32[1,16], index: 4, kind: input, shape index: {}]   ;;  %s375_s6 = inlined_call_operand.vmem [shape: f32[1,8], index: 6, kind: input, shape index: {}]   ;;  %s376_s7 = inlined_call_operand.vmem [shape: f32[16,8], index: 7, kind: output, shape index: {}]  }
   0x1   :  { %262 = vmatprep.subr.bf16.mxu0 %v292_v0  ;;  %v286_v1 = vld [vmem:[%s369_s1] sm:$0xff]   ;;  %266 = vmatprep.mubr.msk.bf16.mxu0 %vm293_vm0, %v292_v0  ;;  %v287_v2 = vld [vmem:[%s369_s1 + $0x8] sm:$0xff]   ;;  %vm235_vm3 = vcmask 64512  }
   0x2   :  { %270 = vmatprep.subr.bf16.mxu1 %v292_v0  ;;  %274 = vmatprep.mubr.msk.bf16.mxu1 %vm293_vm0, %v292_v0  ;;  %v288_v3 = vld [vmem:[%s370_s0] sm:$0xff]   ;;  %v290_v5 = vld [vmem:[%s371_s3 + $0x8] sm:$0xff]  }
   0x3   :  { %263 = vmatpush3.bf16.msra.mxu0 %v286_v1  ;;  %v289_v4 = vld [vmem:[%s371_s3] sm:$0xff]  }
   0x4   :  { %264 = vmatprep.subr.bf16.mxu0 %v292_v0  ;;  %271 = vmatpush3.bf16.msra.mxu1 %v289_v4  ;;  %v242_v6 = vld [vmem:[%s372_s2] ss:$0 sm:$0xff] }
   0x5   :  { %272 = vmatprep.subr.bf16.mxu1 %v292_v0  ;;  %v291_v16 = vld [vmem:[%s373_s5] sm:$0xff]  }
   0x6   :  { %v247_v17 = vld [vmem:[%s374_s4] ss:$0 sm:$0xff] }
   0x7   :  { %265 = vmatpush3.bf16.msra.mxu0 %v287_v2  ;;  %v251_v27 = vld [vmem:[%s375_s6] ss:$0 sm:$0xff] }
   0x8   :  { %278 = vmatprep.subr.bf16.mxu0 %v292_v0  ;;  %273 = vmatpush3.bf16.msra.mxu1 %v290_v5 }
   0xa   :  { %267 = vmatmul.mubr.msk.bf16.vlgmr.msra.gmra.mrb[0].mxu0 %vm57_vm1, %v288_v3 }
   0xb   :  { %280 = vmatprep.mubr.msk.bf16.mxu0 %vm293_vm0, %v292_v0  ;;  %279 = vmatpush3.bf16.msra.mxu0 %v291_v16 }
  0xdd   :  { %v95_v7 = vpop.f32.mrb[0].mxu0 }
  0xde   :  { %v96_v8 = vadd.f32 %v242_v6, %v95_v7  ;;  %v268_v9 = vpop.f32.mrb[1].mxu0 }
  0xdf   :  { %v98_v10 = vpop.f32.mrb[2].mxu0 }
  0xe0   :  { %v99_v11 = vadd.f32 %v242_v6, %v98_v10  ;;  %v269_v12 = vpop.f32.mrb[3].mxu0  ;;  %v102_v13 = vmax.f32 %v96_v8, 0.0 }
  0xe2   :  { %v103_v14 = vmax.f32 %v99_v11, 0.0 }
  0xe4   :  { %v104_v15 = vpack.c.bf16 %v103_v14, %v102_v13 }
  0xe6   :  { %275 = vmatmul.mubr.msk.bf16.vlgmr.msra.gmra.mrb[0].mxu1 %vm57_vm1, %v104_v15 }
 0x1b9   :  { %v165_v18 = vpop.f32.mrb[0].mxu1 }
 0x1ba   :  { %v166_v19 = vadd.f32 %v247_v17, %v165_v18  ;;  %v276_v20 = vpop.f32.mrb[1].mxu1 }
 0x1bb   :  { %v168_v21 = vpop.f32.mrb[2].mxu1 }
 0x1bc   :  { %v169_v22 = vadd.f32 %v247_v17, %v168_v21  ;;  %v277_v23 = vpop.f32.mrb[3].mxu1  ;;  %v172_v24 = vmax.f32 %v166_v19, 0.0 }
 0x1be   :  { %v173_v25 = vmax.f32 %v169_v22, 0.0 }
 0x1c0   :  { %v174_v26 = vpack.c.bf16 %v173_v25, %v172_v24 }
 0x1c2   :  { %281 = vmatmul.mubr.msk.bf16.vlgmr.msra.gmra.mrb[4].mxu0 %vm190_vm2, %v174_v26 }
 0x295   :  { %v228_v28 = vpop.f32.mrb[4].mxu0 }
 0x296   :  { %v229_v29 = vadd.f32 %v251_v27, %v228_v28  ;;  %v282_v30 = vpop.f32.mrb[5].mxu0 }
 0x297   :  { %v231_v31 = vpop.f32.mrb[6].mxu0 }
 0x298   :  { %236 = vst.msk [vmem:[%s376_s7] sm:$0xff] %vm235_vm3, %v229_v29  ;;  %v232_v32 = vadd.f32 %v251_v27, %v231_v31  ;;  %v283_v33 = vpop.f32.mrb[7].mxu0 }
 0x29a   :  { %237 = vst.msk [vmem:[%s376_s7 + $0x8] sm:$0xff] %vm235_vm3, %v232_v32 }

</bundles_post_ra>
